<compile_context>
chip_gen: v7x
topology: tpu7x:2x2x1
jax: 0.10.0
libtpu: 0.0.40
codegen_flags: <defaults>
</compile_context>

<pallas_src>
import jax
import jax.numpy as jnp
from jax.experimental import pallas as pl
from jax.experimental.pallas import tpu as pltpu


# ---------------------------------------------------------------------------
# Pallas kernels
# ---------------------------------------------------------------------------
def _conv_relu_pool_kernel(pa_ref, pb_ref, pc_ref, pd_ref, w_ref, b_ref, o_ref):
    """Fused conv (matmul over pre-gathered patches) + bias + ReLU + 2x2 maxpool.

    pa..pd: [K, M] bf16 patch matrices, one per pooling phase
            (K = kh*kw*Cin, M = Hp*Wp pooled pixels of one image).
    w_ref:  [Cout, K] bf16; b_ref: [Cout, 1] f32; o_ref: [Cout, M] bf16.
    relu(maxpool(conv)) == relu(max over phases) since ReLU is monotone.
    """
    w = w_ref[...]

    def mm(p_ref):
        return jnp.dot(w, p_ref[...], preferred_element_type=jnp.float32)

    m = jnp.maximum(jnp.maximum(mm(pa_ref), mm(pb_ref)),
                    jnp.maximum(mm(pc_ref), mm(pd_ref)))
    o_ref[...] = jnp.maximum(m + b_ref[...], 0.0).astype(o_ref.dtype)


def _fc_stack_kernel(x_ref, w1_ref, b1_ref, w2_ref, b2_ref, w3_ref, b3_ref, o_ref):
    """fc1+ReLU -> fc2+ReLU -> fc3, fully resident in VMEM."""
    h = jnp.dot(x_ref[...], w1_ref[...], preferred_element_type=jnp.float32) + b1_ref[...]
    h = jnp.maximum(h, 0.0).astype(w2_ref.dtype)
    h = jnp.dot(h, w2_ref[...], preferred_element_type=jnp.float32) + b2_ref[...]
    h = jnp.maximum(h, 0.0).astype(w3_ref.dtype)
    o_ref[...] = (jnp.dot(h, w3_ref[...], preferred_element_type=jnp.float32)
                  + b3_ref[...]).astype(o_ref.dtype)


# ---------------------------------------------------------------------------
# Wrappers
# ---------------------------------------------------------------------------
def _pooled_phase_patches(x, kh, kw):
    """x: [B, Cin, H, W]. Returns the 4 pooling-phase im2col patch tensors,
    each [B, kh*kw*Cin, Hp*Wp] (K ordered (i, j, c); M ordered (hp, wp)),
    plus (Hp, Wp) of the pooled output."""
    # TODO(synk): the patch/phase gather stays in XLA (static strided slices +
    # one concat per phase); an in-kernel gather would need non-contiguous
    # slab reshapes that Mosaic lowers poorly at these tiny shapes.
    B, C, H, W = x.shape
    Hp, Wp = (H - kh + 1) // 2, (W - kw + 1) // 2
    phases = []
    for pr in (0, 1):
        for qc in (0, 1):
            taps = [x[:, :, pr + i: pr + i + 2 * Hp: 2, qc + j: qc + j + 2 * Wp: 2]
                    for i in range(kh) for j in range(kw)]
            p = jnp.stack(taps, axis=1)                  # [B, kh*kw, C, Hp, Wp]
            phases.append(p.reshape(B, kh * kw * C, Hp * Wp))
    return phases, (Hp, Wp)


def conv_relu_pool(x, w2d, bias, *, kh, kw):
    """Conv2d(stride=1, pad=0) + ReLU + MaxPool2d(2, 2) as one pallas_call.
    x: [B, Cin, H, W] bf16; w2d: [Cout, kh*kw*Cin] bf16; bias: [Cout, 1] f32.
    Returns [B, Cout, Hp, Wp] bf16."""
    B = x.shape[0]
    Cout, K = w2d.shape
    phases, (Hp, Wp) = _pooled_phase_patches(x, kh, kw)
    M = Hp * Wp
    out = pl.pallas_call(
        _conv_relu_pool_kernel,
        out_shape=jax.ShapeDtypeStruct((B, Cout, M), jnp.bfloat16),
        grid=(B,),
        in_specs=[
            pl.BlockSpec((None, K, M), lambda b: (b, 0, 0)),
            pl.BlockSpec((None, K, M), lambda b: (b, 0, 0)),
            pl.BlockSpec((None, K, M), lambda b: (b, 0, 0)),
            pl.BlockSpec((None, K, M), lambda b: (b, 0, 0)),
            pl.BlockSpec((Cout, K), lambda b: (0, 0)),
            pl.BlockSpec((Cout, 1), lambda b: (0, 0)),
        ],
        out_specs=pl.BlockSpec((None, Cout, M), lambda b: (b, 0, 0)),
        compiler_params=pltpu.CompilerParams(
            dimension_semantics=("parallel",)),   # batch tiles -> both v7x TCs
    )(*phases, w2d, bias)
    return out.reshape(B, Cout, Hp, Wp)


def fc_stack(x, w1, b1, w2, b2, w3, b3):
    """Fused fc1+ReLU -> fc2+ReLU -> fc3. x: [B, 400] bf16 -> [B, 10] f32."""
    B = x.shape[0]
    N = w3.shape[1]
    return pl.pallas_call(
        _fc_stack_kernel,
        out_shape=jax.ShapeDtypeStruct((B, N), jnp.float32),
    )(x, w1, b1, w2, b2, w3, b3)


# ---------------------------------------------------------------------------
# Parameters (deterministic synthetic init, PyTorch shapes) + one-time relayout
# ---------------------------------------------------------------------------
def init_params(key):
    ks = jax.random.split(key, 10)

    def u(k, shape, fan_in):
        bound = 1.0 / jnp.sqrt(fan_in)
        return jax.random.uniform(k, shape, jnp.float32, -bound, bound)

    return {
        "conv1_w": u(ks[0], (6, 3, 5, 5), 3 * 5 * 5),
        "conv1_b": u(ks[1], (6,), 3 * 5 * 5),
        "conv2_w": u(ks[2], (16, 6, 5, 5), 6 * 5 * 5),
        "conv2_b": u(ks[3], (16,), 6 * 5 * 5),
        "fc1_w": u(ks[4], (120, 400), 400),
        "fc1_b": u(ks[5], (120,), 400),
        "fc2_w": u(ks[6], (84, 120), 120),
        "fc2_b": u(ks[7], (84,), 120),
        "fc3_w": u(ks[8], (10, 84), 84),
        "fc3_b": u(ks[9], (10,), 84),
    }


def prepare_params(params):
    """One-time relayout: conv weights -> [Cout, kh*kw*Cin] with (i, j, c)
    K-order matching the patch gather; FC weights pre-transposed to [K, N];
    matmul operands cast to bf16 (f32 accumulation in-kernel); biases f32."""
    def conv_wt(w):
        cout, cin, kh, kw = w.shape
        return w.transpose(0, 2, 3, 1).reshape(cout, kh * kw * cin).astype(jnp.bfloat16)

    return {
        "c1_w": conv_wt(params["conv1_w"]),
        "c1_b": params["conv1_b"].reshape(-1, 1),
        "c2_w": conv_wt(params["conv2_w"]),
        "c2_b": params["conv2_b"].reshape(-1, 1),
        "fc1_w": params["fc1_w"].T.astype(jnp.bfloat16),   # [400, 120], (c,h,w) K-order
        "fc1_b": params["fc1_b"].reshape(1, -1),
        "fc2_w": params["fc2_w"].T.astype(jnp.bfloat16),   # [120, 84]
        "fc2_b": params["fc2_b"].reshape(1, -1),
        "fc3_w": params["fc3_w"].T.astype(jnp.bfloat16),   # [84, 10]
        "fc3_b": params["fc3_b"].reshape(1, -1),
    }


# ---------------------------------------------------------------------------
# Forward pass (mirrors Net.forward)
# ---------------------------------------------------------------------------
def net_forward(p, x):
    # x: [B, 3, 32, 32] (NCHW, matching PyTorch)
    x = x.astype(jnp.bfloat16)
    x = conv_relu_pool(x, p["c1_w"], p["c1_b"], kh=5, kw=5)   # [B, 6, 14, 14]
    x = conv_relu_pool(x, p["c2_w"], p["c2_b"], kh=5, kw=5)   # [B, 16, 5, 5]
    x = x.reshape(x.shape[0], -1)        # torch.flatten(x, 1): (c, h, w) order -> [B, 400]
    return fc_stack(x, p["fc1_w"], p["fc1_b"], p["fc2_w"], p["fc2_b"],
                    p["fc3_w"], p["fc3_b"])                   # [B, 10] f32


if __name__ == "__main__":
    key = jax.random.PRNGKey(0)
    pkey, xkey = jax.random.split(key)
    params = prepare_params(init_params(pkey))
    # Input spatial size must be 32x32 so that flatten yields 16*5*5 = 400.
    x = jax.random.normal(xkey, (2, 3, 32, 32), jnp.float32)

    fwd = jax.jit(net_forward)
    out = jax.block_until_ready(fwd(params, x))
    assert out.shape == (2, 10) and out.dtype == jnp.float32
    print("KERNEL_OK")
</pallas_src>

<mosaic_0001>
module attributes {stable_mosaic.version = 11 : i64} {
  func.func @_conv_relu_pool_kernel(%arg0: i32, %arg1: memref<1x75x196xbf16, #tpu.memory_space<vmem>>, %arg2: memref<1x75x196xbf16, #tpu.memory_space<vmem>>, %arg3: memref<1x75x196xbf16, #tpu.memory_space<vmem>>, %arg4: memref<1x75x196xbf16, #tpu.memory_space<vmem>>, %arg5: memref<6x75xbf16, #tpu.memory_space<vmem>>, %arg6: memref<6x1xf32, #tpu.memory_space<vmem>>, %arg7: memref<1x6x196xbf16, #tpu.memory_space<vmem>>) attributes {dimension_semantics = [#tpu.dimension_semantics<parallel>], iteration_bounds = array<i64: 2>, scalar_prefetch = 0 : i64, scratch_operands = 0 : i64, tpu.core_type = #tpu.core_type<tc>, window_params = [{transform_indices = @transform_0, window_bounds = array<i64: 1, 75, 196>}, {transform_indices = @transform_1, window_bounds = array<i64: 1, 75, 196>}, {transform_indices = @transform_2, window_bounds = array<i64: 1, 75, 196>}, {transform_indices = @transform_3, window_bounds = array<i64: 1, 75, 196>}, {pipeline_mode = #tpu.pipeline_mode<synchronous>, transform_indices = @transform_4, window_bounds = array<i64: 6, 75>}, {pipeline_mode = #tpu.pipeline_mode<synchronous>, transform_indices = @transform_5, window_bounds = array<i64: 6, 1>}, {transform_indices = @transform_6, window_bounds = array<i64: 1, 6, 196>}]} {
    %c0 = arith.constant 0 : index
    %c0_0 = arith.constant 0 : index
    %0 = vector.load %arg5[%c0, %c0_0] : memref<6x75xbf16, #tpu.memory_space<vmem>>, vector<6x75xbf16>
    %c0_1 = arith.constant 0 : index
    %c0_2 = arith.constant 0 : index
    %c0_3 = arith.constant 0 : index
    %1 = vector.load %arg1[%c0_1, %c0_2, %c0_3] : memref<1x75x196xbf16, #tpu.memory_space<vmem>>, vector<1x75x196xbf16>
    %2 = vector.shape_cast %1 : vector<1x75x196xbf16> to vector<75x196xbf16>
    %cst = arith.constant dense<0.000000e+00> : vector<6x196xf32>
    %3 = tpu.matmul %0, %2, %cst {dimension_numbers = #tpu.dot_dimension_numbers<[1], [0], [0], [1], [0, 0, 1, 1], [], []>} : vector<6x75xbf16>, vector<75x196xbf16>, vector<6x196xf32> -> vector<6x196xf32>
    %c0_4 = arith.constant 0 : index
    %c0_5 = arith.constant 0 : index
    %c0_6 = arith.constant 0 : index
    %4 = vector.load %arg2[%c0_4, %c0_5, %c0_6] : memref<1x75x196xbf16, #tpu.memory_space<vmem>>, vector<1x75x196xbf16>
    %5 = vector.shape_cast %4 : vector<1x75x196xbf16> to vector<75x196xbf16>
    %cst_7 = arith.constant dense<0.000000e+00> : vector<6x196xf32>
    %6 = tpu.matmul %0, %5, %cst_7 {dimension_numbers = #tpu.dot_dimension_numbers<[1], [0], [0], [1], [0, 0, 1, 1], [], []>} : vector<6x75xbf16>, vector<75x196xbf16>, vector<6x196xf32> -> vector<6x196xf32>
    %7 = arith.maximumf %3, %6 : vector<6x196xf32>
    %c0_8 = arith.constant 0 : index
    %c0_9 = arith.constant 0 : index
    %c0_10 = arith.constant 0 : index
    %8 = vector.load %arg3[%c0_8, %c0_9, %c0_10] : memref<1x75x196xbf16, #tpu.memory_space<vmem>>, vector<1x75x196xbf16>
    %9 = vector.shape_cast %8 : vector<1x75x196xbf16> to vector<75x196xbf16>
    %cst_11 = arith.constant dense<0.000000e+00> : vector<6x196xf32>
    %10 = tpu.matmul %0, %9, %cst_11 {dimension_numbers = #tpu.dot_dimension_numbers<[1], [0], [0], [1], [0, 0, 1, 1], [], []>} : vector<6x75xbf16>, vector<75x196xbf16>, vector<6x196xf32> -> vector<6x196xf32>
    %c0_12 = arith.constant 0 : index
    %c0_13 = arith.constant 0 : index
    %c0_14 = arith.constant 0 : index
    %11 = vector.load %arg4[%c0_12, %c0_13, %c0_14] : memref<1x75x196xbf16, #tpu.memory_space<vmem>>, vector<1x75x196xbf16>
    %12 = vector.shape_cast %11 : vector<1x75x196xbf16> to vector<75x196xbf16>
    %cst_15 = arith.constant dense<0.000000e+00> : vector<6x196xf32>
    %13 = tpu.matmul %0, %12, %cst_15 {dimension_numbers = #tpu.dot_dimension_numbers<[1], [0], [0], [1], [0, 0, 1, 1], [], []>} : vector<6x75xbf16>, vector<75x196xbf16>, vector<6x196xf32> -> vector<6x196xf32>
    %14 = arith.maximumf %10, %13 : vector<6x196xf32>
    %15 = arith.maximumf %7, %14 : vector<6x196xf32>
    %c0_16 = arith.constant 0 : index
    %c0_17 = arith.constant 0 : index
    %16 = vector.load %arg6[%c0_16, %c0_17] : memref<6x1xf32, #tpu.memory_space<vmem>>, vector<6x1xf32>
    %17 = vector.broadcast %16 : vector<6x1xf32> to vector<6x196xf32>
    %18 = arith.addf %15, %17 : vector<6x196xf32>
    %cst_18 = arith.constant 0.000000e+00 : f32
    %19 = vector.broadcast %cst_18 : f32 to vector<6x196xf32>
    %20 = arith.maximumf %18, %19 : vector<6x196xf32>
    %21 = arith.truncf %20 : vector<6x196xf32> to vector<6x196xbf16>
    %c0_19 = arith.constant 0 : index
    %c0_20 = arith.constant 0 : index
    %c0_21 = arith.constant 0 : index
    %22 = vector.load %arg7[%c0_19, %c0_20, %c0_21] : memref<1x6x196xbf16, #tpu.memory_space<vmem>>, vector<1x6x196xbf16>
    %23 = vector.shape_cast %22 : vector<1x6x196xbf16> to vector<6x196xbf16>
    %24 = vector.shape_cast %21 : vector<6x196xbf16> to vector<1x6x196xbf16>
    tpu.vector_store %arg7[%c0_19, %c0_20, %c0_21], %24 {strides = array<i32>} : memref<1x6x196xbf16, #tpu.memory_space<vmem>>, vector<1x6x196xbf16>,
    return
  }
  func.func @transform_0(%arg0: i32) -> (i32, i32, i32) {
    %c0_i32 = arith.constant 0 : i32
    %c0_i32_0 = arith.constant 0 : i32
    %c0_i32_1 = arith.constant 0 : i32
    return %arg0, %c0_i32, %c0_i32_0 : i32, i32, i32
  }
  func.func @transform_1(%arg0: i32) -> (i32, i32, i32) {
    %c0_i32 = arith.constant 0 : i32
    %c0_i32_0 = arith.constant 0 : i32
    %c0_i32_1 = arith.constant 0 : i32
    return %arg0, %c0_i32, %c0_i32_0 : i32, i32, i32
  }
  func.func @transform_2(%arg0: i32) -> (i32, i32, i32) {
    %c0_i32 = arith.constant 0 : i32
    %c0_i32_0 = arith.constant 0 : i32
    %c0_i32_1 = arith.constant 0 : i32
    return %arg0, %c0_i32, %c0_i32_0 : i32, i32, i32
  }
  func.func @transform_3(%arg0: i32) -> (i32, i32, i32) {
    %c0_i32 = arith.constant 0 : i32
    %c0_i32_0 = arith.constant 0 : i32
    %c0_i32_1 = arith.constant 0 : i32
    return %arg0, %c0_i32, %c0_i32_0 : i32, i32, i32
  }
  func.func @transform_4(%arg0: i32) -> (i32, i32) {
    %c0_i32 = arith.constant 0 : i32
    %c0_i32_0 = arith.constant 0 : i32
    %c0_i32_1 = arith.constant 0 : i32
    return %c0_i32, %c0_i32_0 : i32, i32
  }
  func.func @transform_5(%arg0: i32) -> (i32, i32) {
    %c0_i32 = arith.constant 0 : i32
    %c0_i32_0 = arith.constant 0 : i32
    %c0_i32_1 = arith.constant 0 : i32
    return %c0_i32, %c0_i32_0 : i32, i32
  }
  func.func @transform_6(%arg0: i32) -> (i32, i32, i32) {
    %c0_i32 = arith.constant 0 : i32
    %c0_i32_0 = arith.constant 0 : i32
    %c0_i32_1 = arith.constant 0 : i32
    return %arg0, %c0_i32, %c0_i32_0 : i32, i32, i32
  }
}

module attributes {stable_mosaic.version = 11 : i64} {
  func.func @_conv_relu_pool_kernel(%arg0: i32, %arg1: memref<1x150x25xbf16, #tpu.memory_space<vmem>>, %arg2: memref<1x150x25xbf16, #tpu.memory_space<vmem>>, %arg3: memref<1x150x25xbf16, #tpu.memory_space<vmem>>, %arg4: memref<1x150x25xbf16, #tpu.memory_space<vmem>>, %arg5: memref<16x150xbf16, #tpu.memory_space<vmem>>, %arg6: memref<16x1xf32, #tpu.memory_space<vmem>>, %arg7: memref<1x16x25xbf16, #tpu.memory_space<vmem>>) attributes {dimension_semantics = [#tpu.dimension_semantics<parallel>], iteration_bounds = array<i64: 2>, scalar_prefetch = 0 : i64, scratch_operands = 0 : i64, tpu.core_type = #tpu.core_type<tc>, window_params = [{transform_indices = @transform_0, window_bounds = array<i64: 1, 150, 25>}, {transform_indices = @transform_1, window_bounds = array<i64: 1, 150, 25>}, {transform_indices = @transform_2, window_bounds = array<i64: 1, 150, 25>}, {transform_indices = @transform_3, window_bounds = array<i64: 1, 150, 25>}, {pipeline_mode = #tpu.pipeline_mode<synchronous>, transform_indices = @transform_4, window_bounds = array<i64: 16, 150>}, {pipeline_mode = #tpu.pipeline_mode<synchronous>, transform_indices = @transform_5, window_bounds = array<i64: 16, 1>}, {transform_indices = @transform_6, window_bounds = array<i64: 1, 16, 25>}]} {
    %c0 = arith.constant 0 : index
    %c0_0 = arith.constant 0 : index
    %0 = vector.load %arg5[%c0, %c0_0] : memref<16x150xbf16, #tpu.memory_space<vmem>>, vector<16x150xbf16>
    %c0_1 = arith.constant 0 : index
    %c0_2 = arith.constant 0 : index
    %c0_3 = arith.constant 0 : index
    %1 = vector.load %arg1[%c0_1, %c0_2, %c0_3] : memref<1x150x25xbf16, #tpu.memory_space<vmem>>, vector<1x150x25xbf16>
    %2 = vector.shape_cast %1 : vector<1x150x25xbf16> to vector<150x25xbf16>
    %cst = arith.constant dense<0.000000e+00> : vector<16x25xf32>
    %3 = tpu.matmul %0, %2, %cst {dimension_numbers = #tpu.dot_dimension_numbers<[1], [0], [0], [1], [0, 0, 1, 1], [], []>} : vector<16x150xbf16>, vector<150x25xbf16>, vector<16x25xf32> -> vector<16x25xf32>
    %c0_4 = arith.constant 0 : index
    %c0_5 = arith.constant 0 : index
    %c0_6 = arith.constant 0 : index
    %4 = vector.load %arg2[%c0_4, %c0_5, %c0_6] : memref<1x150x25xbf16, #tpu.memory_space<vmem>>, vector<1x150x25xbf16>
    %5 = vector.shape_cast %4 : vector<1x150x25xbf16> to vector<150x25xbf16>
    %cst_7 = arith.constant dense<0.000000e+00> : vector<16x25xf32>
    %6 = tpu.matmul %0, %5, %cst_7 {dimension_numbers = #tpu.dot_dimension_numbers<[1], [0], [0], [1], [0, 0, 1, 1], [], []>} : vector<16x150xbf16>, vector<150x25xbf16>, vector<16x25xf32> -> vector<16x25xf32>
    %7 = arith.maximumf %3, %6 : vector<16x25xf32>
    %c0_8 = arith.constant 0 : index
    %c0_9 = arith.constant 0 : index
    %c0_10 = arith.constant 0 : index
    %8 = vector.load %arg3[%c0_8, %c0_9, %c0_10] : memref<1x150x25xbf16, #tpu.memory_space<vmem>>, vector<1x150x25xbf16>
    %9 = vector.shape_cast %8 : vector<1x150x25xbf16> to vector<150x25xbf16>
    %cst_11 = arith.constant dense<0.000000e+00> : vector<16x25xf32>
    %10 = tpu.matmul %0, %9, %cst_11 {dimension_numbers = #tpu.dot_dimension_numbers<[1], [0], [0], [1], [0, 0, 1, 1], [], []>} : vector<16x150xbf16>, vector<150x25xbf16>, vector<16x25xf32> -> vector<16x25xf32>
    %c0_12 = arith.constant 0 : index
    %c0_13 = arith.constant 0 : index
    %c0_14 = arith.constant 0 : index
    %11 = vector.load %arg4[%c0_12, %c0_13, %c0_14] : memref<1x150x25xbf16, #tpu.memory_space<vmem>>, vector<1x150x25xbf16>
    %12 = vector.shape_cast %11 : vector<1x150x25xbf16> to vector<150x25xbf16>
    %cst_15 = arith.constant dense<0.000000e+00> : vector<16x25xf32>
    %13 = tpu.matmul %0, %12, %cst_15 {dimension_numbers = #tpu.dot_dimension_numbers<[1], [0], [0], [1], [0, 0, 1, 1], [], []>} : vector<16x150xbf16>, vector<150x25xbf16>, vector<16x25xf32> -> vector<16x25xf32>
    %14 = arith.maximumf %10, %13 : vector<16x25xf32>
    %15 = arith.maximumf %7, %14 : vector<16x25xf32>
    %c0_16 = arith.constant 0 : index
    %c0_17 = arith.constant 0 : index
    %16 = vector.load %arg6[%c0_16, %c0_17] : memref<16x1xf32, #tpu.memory_space<vmem>>, vector<16x1xf32>
    %17 = vector.broadcast %16 : vector<16x1xf32> to vector<16x25xf32>
    %18 = arith.addf %15, %17 : vector<16x25xf32>
    %cst_18 = arith.constant 0.000000e+00 : f32
    %19 = vector.broadcast %cst_18 : f32 to vector<16x25xf32>
    %20 = arith.maximumf %18, %19 : vector<16x25xf32>
    %21 = arith.truncf %20 : vector<16x25xf32> to vector<16x25xbf16>
    %c0_19 = arith.constant 0 : index
    %c0_20 = arith.constant 0 : index
    %c0_21 = arith.constant 0 : index
    %22 = vector.load %arg7[%c0_19, %c0_20, %c0_21] : memref<1x16x25xbf16, #tpu.memory_space<vmem>>, vector<1x16x25xbf16>
    %23 = vector.shape_cast %22 : vector<1x16x25xbf16> to vector<16x25xbf16>
    %24 = vector.shape_cast %21 : vector<16x25xbf16> to vector<1x16x25xbf16>
    tpu.vector_store %arg7[%c0_19, %c0_20, %c0_21], %24 {strides = array<i32>} : memref<1x16x25xbf16, #tpu.memory_space<vmem>>, vector<1x16x25xbf16>,
    return
  }
  func.func @transform_0(%arg0: i32) -> (i32, i32, i32) {
    %c0_i32 = arith.constant 0 : i32
    %c0_i32_0 = arith.constant 0 : i32
    %c0_i32_1 = arith.constant 0 : i32
    return %arg0, %c0_i32, %c0_i32_0 : i32, i32, i32
  }
  func.func @transform_1(%arg0: i32) -> (i32, i32, i32) {
    %c0_i32 = arith.constant 0 : i32
    %c0_i32_0 = arith.constant 0 : i32
    %c0_i32_1 = arith.constant 0 : i32
    return %arg0, %c0_i32, %c0_i32_0 : i32, i32, i32
  }
  func.func @transform_2(%arg0: i32) -> (i32, i32, i32) {
    %c0_i32 = arith.constant 0 : i32
    %c0_i32_0 = arith.constant 0 : i32
    %c0_i32_1 = arith.constant 0 : i32
    return %arg0, %c0_i32, %c0_i32_0 : i32, i32, i32
  }
  func.func @transform_3(%arg0: i32) -> (i32, i32, i32) {
    %c0_i32 = arith.constant 0 : i32
    %c0_i32_0 = arith.constant 0 : i32
    %c0_i32_1 = arith.constant 0 : i32
    return %arg0, %c0_i32, %c0_i32_0 : i32, i32, i32
  }
  func.func @transform_4(%arg0: i32) -> (i32, i32) {
    %c0_i32 = arith.constant 0 : i32
    %c0_i32_0 = arith.constant 0 : i32
    %c0_i32_1 = arith.constant 0 : i32
    return %c0_i32, %c0_i32_0 : i32, i32
  }
  func.func @transform_5(%arg0: i32) -> (i32, i32) {
    %c0_i32 = arith.constant 0 : i32
    %c0_i32_0 = arith.constant 0 : i32
    %c0_i32_1 = arith.constant 0 : i32
    return %c0_i32, %c0_i32_0 : i32, i32
  }
  func.func @transform_6(%arg0: i32) -> (i32, i32, i32) {
    %c0_i32 = arith.constant 0 : i32
    %c0_i32_0 = arith.constant 0 : i32
    %c0_i32_1 = arith.constant 0 : i32
    return %arg0, %c0_i32, %c0_i32_0 : i32, i32, i32
  }
}

module attributes {stable_mosaic.version = 11 : i64} {
  func.func @_fc_stack_kernel(%arg0: memref<2x400xbf16, #tpu.memory_space<vmem>>, %arg1: memref<400x120xbf16, #tpu.memory_space<vmem>>, %arg2: memref<1x120xf32, #tpu.memory_space<vmem>>, %arg3: memref<120x84xbf16, #tpu.memory_space<vmem>>, %arg4: memref<1x84xf32, #tpu.memory_space<vmem>>, %arg5: memref<84x10xbf16, #tpu.memory_space<vmem>>, %arg6: memref<1x10xf32, #tpu.memory_space<vmem>>, %arg7: memref<2x10xf32, #tpu.memory_space<vmem>>) attributes {dimension_semantics = [], scalar_prefetch = 0 : i64, scratch_operands = 0 : i64, tpu.core_type = #tpu.core_type<tc>} {
    %c0 = arith.constant 0 : index
    %c0_0 = arith.constant 0 : index
    %0 = vector.load %arg0[%c0, %c0_0] : memref<2x400xbf16, #tpu.memory_space<vmem>>, vector<2x400xbf16>
    %c0_1 = arith.constant 0 : index
    %c0_2 = arith.constant 0 : index
    %1 = vector.load %arg1[%c0_1, %c0_2] : memref<400x120xbf16, #tpu.memory_space<vmem>>, vector<400x120xbf16>
    %cst = arith.constant dense<0.000000e+00> : vector<2x120xf32>
    %2 = tpu.matmul %0, %1, %cst {dimension_numbers = #tpu.dot_dimension_numbers<[1], [0], [0], [1], [0, 0, 1, 1], [], []>} : vector<2x400xbf16>, vector<400x120xbf16>, vector<2x120xf32> -> vector<2x120xf32>
    %c0_3 = arith.constant 0 : index
    %c0_4 = arith.constant 0 : index
    %3 = vector.load %arg2[%c0_3, %c0_4] : memref<1x120xf32, #tpu.memory_space<vmem>>, vector<1x120xf32>
    %4 = vector.broadcast %3 : vector<1x120xf32> to vector<2x120xf32>
    %5 = arith.addf %2, %4 : vector<2x120xf32>
    %cst_5 = arith.constant 0.000000e+00 : f32
    %6 = vector.broadcast %cst_5 : f32 to vector<2x120xf32>
    %7 = arith.maximumf %5, %6 : vector<2x120xf32>
    %8 = arith.truncf %7 : vector<2x120xf32> to vector<2x120xbf16>
    %c0_6 = arith.constant 0 : index
    %c0_7 = arith.constant 0 : index
    %9 = vector.load %arg3[%c0_6, %c0_7] : memref<120x84xbf16, #tpu.memory_space<vmem>>, vector<120x84xbf16>
    %cst_8 = arith.constant dense<0.000000e+00> : vector<2x84xf32>
    %10 = tpu.matmul %8, %9, %cst_8 {dimension_numbers = #tpu.dot_dimension_numbers<[1], [0], [0], [1], [0, 0, 1, 1], [], []>} : vector<2x120xbf16>, vector<120x84xbf16>, vector<2x84xf32> -> vector<2x84xf32>
    %c0_9 = arith.constant 0 : index
    %c0_10 = arith.constant 0 : index
    %11 = vector.load %arg4[%c0_9, %c0_10] : memref<1x84xf32, #tpu.memory_space<vmem>>, vector<1x84xf32>
    %12 = vector.broadcast %11 : vector<1x84xf32> to vector<2x84xf32>
    %13 = arith.addf %10, %12 : vector<2x84xf32>
    %cst_11 = arith.constant 0.000000e+00 : f32
    %14 = vector.broadcast %cst_11 : f32 to vector<2x84xf32>
    %15 = arith.maximumf %13, %14 : vector<2x84xf32>
    %16 = arith.truncf %15 : vector<2x84xf32> to vector<2x84xbf16>
    %c0_12 = arith.constant 0 : index
    %c0_13 = arith.constant 0 : index
    %17 = vector.load %arg5[%c0_12, %c0_13] : memref<84x10xbf16, #tpu.memory_space<vmem>>, vector<84x10xbf16>
    %cst_14 = arith.constant dense<0.000000e+00> : vector<2x10xf32>
    %18 = tpu.matmul %16, %17, %cst_14 {dimension_numbers = #tpu.dot_dimension_numbers<[1], [0], [0], [1], [0, 0, 1, 1], [], []>} : vector<2x84xbf16>, vector<84x10xbf16>, vector<2x10xf32> -> vector<2x10xf32>
    %c0_15 = arith.constant 0 : index
    %c0_16 = arith.constant 0 : index
    %19 = vector.load %arg6[%c0_15, %c0_16] : memref<1x10xf32, #tpu.memory_space<vmem>>, vector<1x10xf32>
    %20 = vector.broadcast %19 : vector<1x10xf32> to vector<2x10xf32>
    %21 = arith.addf %18, %20 : vector<2x10xf32>
    %c0_17 = arith.constant 0 : index
    %c0_18 = arith.constant 0 : index
    %22 = vector.load %arg7[%c0_17, %c0_18] : memref<2x10xf32, #tpu.memory_space<vmem>>, vector<2x10xf32>
    tpu.vector_store %arg7[%c0_17, %c0_18], %21 {strides = array<i32>} : memref<2x10xf32, #tpu.memory_space<vmem>>, vector<2x10xf32>,
    return
  }
}

</mosaic_0001>

<bundles_post_ra>
// kernel: net_forward.3
= control target key start
LH: loop header
LB: loop body
LE: loop exit
PB: predicated region body
PF: predicated region fallthrough
CT: control target
= control target key end

     0   :  { %s1038_s21 = smov 0   ;;  %s1147_s0 = inlined_call_operand.vmem [shape: bf16[2,75,196], index: 0, kind: input, shape index: {}]   ;;  %s1148_s1 = inlined_call_operand.vmem [shape: bf16[2,75,196], index: 1, kind: input, shape index: {}]   ;;  %s1149_s2 = inlined_call_operand.vmem [shape: bf16[2,75,196], index: 2, kind: input, shape index: {}]   ;;  %s1150_s3 = inlined_call_operand.vmem [shape: bf16[2,75,196], index: 3, kind: input, shape index: {}]   ;;  %s1151_s4 = inlined_call_operand.vmem [shape: bf16[6,75], index: 4, kind: input, shape index: {}]   ;;  %s1152_s5 = inlined_call_operand.vmem [shape: f32[6,1], index: 5, kind: input, shape index: {}]   ;;  %s1153_s6 = inlined_call_operand.vmem [shape: bf16[2,6,196], index: 6, kind: output, shape index: {}]  }
   0x1 LB: > { %s861_s22 = sadd.s32 4294967295, %s999_s21   ;;  %p865_p0 = scmp.ge.s32.totalorder %s999_s21, 1  ;;  %s999_s21 = sphi %s1038_s21, %s16_s21  }
   0x2   : > { %p242_p1 = scmp.lt.s32.totalorder %s999_s21, 3 }
   0x4   : > { %p243_p2 = pnand %p865_p0, %p242_p1 }
   0x5   : > { %p287_p3 = scmp.lt.s32.totalorder (!%p243_p2), %s861_s22, 1  ;;  %v1001_v0 = vmov (!%p243_p2), 0   ;;  %v748_v1 = vld [vmem:[%s1152_s5] sm:$0x3f] (!%p243_p2)  ;;  %vm376_vm0 = vcmask (!%p243_p2), 1044480   ;;  %vm377_vm1 = vcmask (!%p243_p2), 1045504  }
   0x6   : > { %246 = sbr.rel (%p243_p2) target bundleno = 283 (0x11b), region = 44  ;;  %418 = vmatprep.mubr.bf16.mxu0 (!%p243_p2), %v1001_v0  ;;  %523 = vmatprep.mubr.bf16.mxu1 (!%p243_p2), %v1001_v0  ;;  %v1002_v11 = vmov (!%p243_p2), 65535   ;;  %v313_v31 = vld [vmem:[%s1151_s4] sm:$0x7] (!%p243_p2)  ;;  %vm372_vm2 = vcmask (!%p243_p2), 613376   ;;  %vm766_vm3 = vcmask (!%p243_p2), 1042432  }
   0x7   : > { %932 = vset.pattern.permute.xlu0 (!%p243_p2), %v1001_v0  ;;  %v378_v12 = vsel (!%p243_p2), %vm376_vm0, 4294967295, %v1002_v11  ;;  %vm767_vm4 = vcmask (!%p243_p2), 555012  }
   0x8   : > { %751 = vperm.xlu0 (!%p243_p2), %932, %v748_v1   ;;  %v1085_v20 = vsel (!%p243_p2), %vm377_vm1, %v378_v12, 0  ;;  %vm768_vm5 = vmor (!%p243_p2), %vm767_vm4, %vm766_vm3 }
   0xd   : > { %s1155_s22 = smov (!%p287_p3, %s861_s22), 1 }
   0xe   : > { %s1055_s25 = smul.u32 80, %s1155_s22  ;;  %s919_s16 = sshll.u32 %s1155_s22, 3 }
   0xf   : > { %s311_s19 = scalar_lea.vmem %s1153_s6, %s919_s16 }
  0x10   : > { %s1061_s28 = scalar_lea.vmem %s1147_s0, %s1055_s25  ;;  %s1067_s7 = scalar_lea.vmem %s1148_s1, %s1055_s25 }
  0x11   : > { %v933_v2 = vld [vmem:[%s1061_s28 + $0x4] ss:$8 sps:$4 sm:$0xff]   ;;  %v937_v4 = vld [vmem:[%s1061_s28] ss:$8 sps:$4 sm:$0xff]   ;;  %v939_v6 = vld [vmem:[%s1061_s28 + $0x14] ss:$8 sps:$4 sm:$0xff]   ;;  %s1092_s10 = scalar_lea.vmem %s1149_s2, %s1055_s25  ;;  %s1103_s13 = scalar_lea.vmem %s1150_s3, %s1055_s25 }
  0x12   : > { %v935_v3 = vld [vmem:[%s1067_s7 + $0x4] ss:$8 sps:$4 sm:$0xff]   ;;  %386 = vmatprep.subr.bf16.mxu0 %v933_v2  ;;  %v938_v5 = vld [vmem:[%s1067_s7] ss:$8 sps:$4 sm:$0xff]   ;;  %v941_v7 = vld [vmem:[%s1067_s7 + $0x14] ss:$8 sps:$4 sm:$0xff]  }
  0x13   : > { %491 = vmatprep.subr.bf16.mxu1 %v935_v3  ;;  %387 = vmatpush1.bf16.msra.mxu0 %v937_v4  ;;  %v943_v8 = vld [vmem:[%s1061_s28 + $0x10] ss:$8 sps:$4 sm:$0xff]   ;;  %v945_v10 = vld [vmem:[%s1061_s28 + $0x24] ss:$8 sps:$4 sm:$0xff]   ;;  %v949_v14 = vld [vmem:[%s1061_s28 + $0x20] ss:$8 sps:$4 sm:$0xff]  }
  0x14   : > { %492 = vmatpush1.bf16.msra.mxu1 %v938_v5  ;;  %388 = vmatprep.subr.bf16.mxu0 %v939_v6  ;;  %v944_v9 = vld [vmem:[%s1067_s7 + $0x10] ss:$8 sps:$4 sm:$0xff]   ;;  %v947_v13 = vld [vmem:[%s1067_s7 + $0x24] ss:$8 sps:$4 sm:$0xff]   ;;  %v950_v15 = vld [vmem:[%s1067_s7 + $0x20] ss:$8 sps:$4 sm:$0xff]  }
  0x15   : > { %493 = vmatprep.subr.bf16.mxu1 %v941_v7  ;;  %v951_v16 = vld [vmem:[%s1061_s28 + $0x34] ss:$8 sps:$4 sm:$0xff]   ;;  %v955_v18 = vld [vmem:[%s1061_s28 + $0x30] ss:$8 sps:$4 sm:$0xff]   ;;  %v965_v29 = vld [vmem:[%s1092_s10 + $0x4] ss:$8 sps:$4 sm:$0xff]  }
  0x16   : > { %v953_v17 = vld [vmem:[%s1067_s7 + $0x34] ss:$8 sps:$4 sm:$0xff]   ;;  %v956_v19 = vld [vmem:[%s1067_s7 + $0x30] ss:$8 sps:$4 sm:$0xff]   ;;  %v968_v30 = vld [vmem:[%s1103_s13 + $0x4] ss:$8 sps:$4 sm:$0xff]  }
  0x17   : > { %389 = vmatpush1.bf16.msra.mxu0 %v943_v8  ;;  %v957_v21 = vld [vmem:[%s1061_s28 + $0x44] ss:$8 sps:$4 sm:$0x3f]   ;;  %v961_v24 = vld [vmem:[%s1061_s28 + $0x40] ss:$8 sps:$4 sm:$0x3f]  }
  0x18   : > { %494 = vmatpush1.bf16.msra.mxu1 %v944_v9  ;;  %390 = vmatprep.subr.bf16.mxu0 %v945_v10  ;;  %v959_v22 = vld [vmem:[%s1067_s7 + $0x44] ss:$8 sps:$4 sm:$0x3f]   ;;  %v384_v23 = vand.u32 %v957_v21, %v1085_v20  ;;  %v962_v25 = vld [vmem:[%s1067_s7 + $0x40] ss:$8 sps:$4 sm:$0x3f]   ;;  %v381_v27 = vand.u32 %v961_v24, %v1085_v20 }
  0x19   : > { %495 = vmatprep.subr.bf16.mxu1 %v947_v13  ;;  %v489_v26 = vand.u32 %v959_v22, %v1085_v20  ;;  %v486_v28 = vand.u32 %v962_v25, %v1085_v20  ;;  %v963_v32 = vld [vmem:[%s1092_s10] ss:$8 sps:$4 sm:$0xff]   ;;  %v971_v34 = vld [vmem:[%s1092_s10 + $0x14] ss:$8 sps:$4 sm:$0xff]   ;;  %v969_v36 = vld [vmem:[%s1092_s10 + $0x10] ss:$8 sps:$4 sm:$0xff]  }
  0x1a   : > { %v966_v33 = vld [vmem:[%s1103_s13] ss:$8 sps:$4 sm:$0xff]   ;;  %v974_v35 = vld [vmem:[%s1103_s13 + $0x14] ss:$8 sps:$4 sm:$0xff]   ;;  %v972_v37 = vld [vmem:[%s1103_s13 + $0x10] ss:$8 sps:$4 sm:$0xff]  }
  0x1b   : > { %391 = vmatpush1.bf16.msra.mxu0 %v949_v14  ;;  %v977_v38 = vld [vmem:[%s1092_s10 + $0x24] ss:$8 sps:$4 sm:$0xff]   ;;  %v975_v40 = vld [vmem:[%s1092_s10 + $0x20] ss:$8 sps:$4 sm:$0xff]   ;;  %v983_v42 = vld [vmem:[%s1092_s10 + $0x34] ss:$8 sps:$4 sm:$0xff]  }
  0x1c   : > { %496 = vmatpush1.bf16.msra.mxu1 %v950_v15  ;;  %392 = vmatprep.subr.bf16.mxu0 %v951_v16  ;;  %v980_v39 = vld [vmem:[%s1103_s13 + $0x24] ss:$8 sps:$4 sm:$0xff]   ;;  %v978_v41 = vld [vmem:[%s1103_s13 + $0x20] ss:$8 sps:$4 sm:$0xff]   ;;  %v986_v43 = vld [vmem:[%s1103_s13 + $0x34] ss:$8 sps:$4 sm:$0xff]  }
  0x1d   : > { %497 = vmatprep.subr.bf16.mxu1 %v953_v17  ;;  %v989_v44 = vld [vmem:[%s1092_s10 + $0x44] ss:$8 sps:$4 sm:$0x3f]   ;;  %v981_v46 = vld [vmem:[%s1092_s10 + $0x30] ss:$8 sps:$4 sm:$0xff]  }
  0x1e   : > { %v992_v45 = vld [vmem:[%s1103_s13 + $0x44] ss:$8 sps:$4 sm:$0x3f]   ;;  %v984_v47 = vld [vmem:[%s1103_s13 + $0x30] ss:$8 sps:$4 sm:$0xff]   ;;  %v596_v50 = vand.u32 %v989_v44, %v1085_v20 }
  0x1f   : > { %393 = vmatpush1.bf16.msra.mxu0 %v955_v18  ;;  %v987_v48 = vld [vmem:[%s1092_s10 + $0x40] ss:$8 sps:$4 sm:$0x3f]   ;;  %v701_v51 = vand.u32 %v992_v45, %v1085_v20 }
  0x20   : > { %498 = vmatpush1.bf16.msra.mxu1 %v956_v19  ;;  %394 = vmatprep.subr.bf16.mxu0 %v384_v23  ;;  %v990_v49 = vld [vmem:[%s1103_s13 + $0x40] ss:$8 sps:$4 sm:$0x3f]   ;;  %v593_v52 = vand.u32 %v987_v48, %v1085_v20 }
  0x21   : > { %499 = vmatprep.subr.bf16.mxu1 %v489_v26  ;;  %v698_v53 = vand.u32 %v990_v49, %v1085_v20 }
  0x23   : > { %395 = vmatpush1.bf16.msra.mxu0 %v381_v27 }
  0x24   : > { %500 = vmatpush1.bf16.msra.mxu1 %v486_v28  ;;  %598 = vmatprep.subr.bf16.mxu0 %v965_v29 }
  0x25   : > { %703 = vmatprep.subr.bf16.mxu1 %v968_v30 }
  0x26   : > { %882 = vmatmul.mubr.msk.bf16.vlgmr.msra.gmra.mrb[0].mxu0 %vm372_vm2, %v313_v31 }
  0x27   : > { %893 = vmatmul.mubr.msk.bf16.vlgmr.msra.gmra.mrb[0].mxu1 %vm372_vm2, %v313_v31  ;;  %599 = vmatpush1.bf16.msra.mxu0 %v963_v32 }
  0x28   : > { %704 = vmatpush1.bf16.msra.mxu1 %v966_v33  ;;  %600 = vmatprep.subr.bf16.mxu0 %v971_v34 }
  0x29   : > { %705 = vmatprep.subr.bf16.mxu1 %v974_v35  ;;  %630 = vmatprep.mubr.bf16.mxu0 %v1001_v0 }
  0x2a   : > { %735 = vmatprep.mubr.bf16.mxu1 %v1001_v0 }
  0x2b   : > { %601 = vmatpush1.bf16.msra.mxu0 %v969_v36 }
  0x2c   : > { %706 = vmatpush1.bf16.msra.mxu1 %v972_v37  ;;  %602 = vmatprep.subr.bf16.mxu0 %v977_v38 }
  0x2d   : > { %707 = vmatprep.subr.bf16.mxu1 %v980_v39 }
  0x2f   : > { %603 = vmatpush1.bf16.msra.mxu0 %v975_v40 }
  0x30   : > { %708 = vmatpush1.bf16.msra.mxu1 %v978_v41  ;;  %604 = vmatprep.subr.bf16.mxu0 %v983_v42 }
  0x31   : > { %709 = vmatprep.subr.bf16.mxu1 %v986_v43 }
  0x33   : > { %605 = vmatpush1.bf16.msra.mxu0 %v981_v46 }
  0x34   : > { %710 = vmatpush1.bf16.msra.mxu1 %v984_v47  ;;  %606 = vmatprep.subr.bf16.mxu0 %v596_v50 }
  0x35   : > { %711 = vmatprep.subr.bf16.mxu1 %v701_v51 }
  0x37   : > { %607 = vmatpush1.bf16.msra.mxu0 %v593_v52 }
  0x38   : > { %712 = vmatpush1.bf16.msra.mxu1 %v698_v53 }
  0x3a   : > { %904 = vmatmul.mubr.msk.bf16.vlgmr.msra.gmra.mrb[4].mxu0 %vm372_vm2, %v313_v31 }
  0x3b   : > { %915 = vmatmul.mubr.msk.bf16.vlgmr.msra.gmra.mrb[4].mxu1 %vm372_vm2, %v313_v31 }
  0x87   : > { %v752_v0 = vpop.permute.xlu0 %751 }
  0xf9   : > { %v420_v54 = vpop.f32.mrb[0].mxu0 }
  0xfa   : > { %v525_v55 = vpop.f32.mrb[0].mxu1  ;;  %v422_v57 = vpop.f32.mrb[1].mxu0 }
  0xfb   : > { %v532_v56 = vmax.f32 %v420_v54, %v525_v55  ;;  %v527_v58 = vpop.f32.mrb[1].mxu1  ;;  %v424_v60 = vpop.f32.mrb[2].mxu0 }
  0xfc   : > { %v533_v59 = vmax.f32 %v422_v57, %v527_v58  ;;  %v529_v61 = vpop.f32.mrb[2].mxu1  ;;  %v425_v62 = vpop.f32.mrb[3].mxu0 }
  0xfd   : > { %v530_v63 = vpop.f32.mrb[3].mxu1 }
 0x10d   : > { %v632_v1 = vpop.f32.mrb[4].mxu0 }
 0x10e   : > { %v737_v2 = vpop.f32.mrb[4].mxu1  ;;  %v634_v4 = vpop.f32.mrb[5].mxu0 }
 0x10f   : > { %v744_v3 = vmax.f32 %v632_v1, %v737_v2  ;;  %v739_v5 = vpop.f32.mrb[5].mxu1  ;;  %v636_v7 = vpop.f32.mrb[6].mxu0 }
 0x110   : > { %v745_v6 = vmax.f32 %v634_v4, %v739_v5  ;;  %v741_v8 = vpop.f32.mrb[6].mxu1  ;;  %v637_v9 = vpop.f32.mrb[7].mxu0 }
 0x111   : > { %v742_v10 = vpop.f32.mrb[7].mxu1  ;;  %v746_v11 = vmax.f32 %v532_v56, %v744_v3 }
 0x112   : > { %v747_v12 = vmax.f32 %v533_v59, %v745_v6 }
 0x113   : > { %v754_v13 = vadd.f32 %v752_v0, %v746_v11 }
 0x114   : > { %v755_v14 = vadd.f32 %v752_v0, %v747_v12 }
 0x115   : > { %v756_v15 = vmax.f32 %v754_v13, 0.0 }
 0x116   : > { %v757_v16 = vmax.f32 %v755_v14, 0.0 }
 0x118   : > { %v920_v17 = vpack.c.bf16 %v757_v16, %v756_v15 }
 0x11a   : > { %769 = vst.msk [vmem:[%s311_s19] sm:$0x77] %vm768_vm5, %v920_v17 }
 0x11b PF: > { %s16_s21 = sadd.s32 1, %s999_s21  }
 0x11c   : > { %p13_p4 = scmp.ge.s32.totalorder %s16_s21, 4  }
 0x11e   :  { %15 = sbr.rel (!%p13_p4) target bundleno = 1 (0x1), region = 83 }

// kernel: net_forward.4
= control target key start
LH: loop header
LB: loop body
LE: loop exit
PB: predicated region body
PF: predicated region fallthrough
CT: control target
= control target key end

     0   :  { %s1095_s21 = smov 0   ;;  %s1252_s0 = inlined_call_operand.vmem [shape: bf16[2,150,25], index: 0, kind: input, shape index: {}]   ;;  %s1253_s1 = inlined_call_operand.vmem [shape: bf16[2,150,25], index: 1, kind: input, shape index: {}]   ;;  %s1254_s2 = inlined_call_operand.vmem [shape: bf16[2,150,25], index: 2, kind: input, shape index: {}]   ;;  %s1255_s3 = inlined_call_operand.vmem [shape: bf16[2,150,25], index: 3, kind: input, shape index: {}]   ;;  %s1256_s4 = inlined_call_operand.vmem [shape: bf16[16,150], index: 4, kind: input, shape index: {}]   ;;  %s1257_s5 = inlined_call_operand.vmem [shape: f32[16,1], index: 5, kind: input, shape index: {}]   ;;  %s1258_s6 = inlined_call_operand.vmem [shape: bf16[2,16,25], index: 6, kind: output, shape index: {}]  }
   0x1 LB: > { %s933_s22 = sadd.s32 4294967295, %s1057_s21   ;;  %p937_p0 = scmp.ge.s32.totalorder %s1057_s21, 1  ;;  %s1057_s21 = sphi %s1095_s21, %s16_s21  }
   0x2   : > { %p242_p1 = scmp.lt.s32.totalorder %s1057_s21, 3 }
   0x4   : > { %p243_p2 = pnand %p937_p0, %p242_p1 }
   0x5   : > { %p287_p3 = scmp.lt.s32.totalorder (!%p243_p2), %s933_s22, 1  ;;  %vm400_vm0 = vcmask (!%p243_p2), 179200   ;;  %v1059_v0 = vmov (!%p243_p2), 0   ;;  %v1108_v1 = vld [vmem:[%s1256_s4 + $0x4] ss:$8 sps:$4 sm:$0xff] (!%p243_p2)   ;;  %vm404_vm1 = vcmask (!%p243_p2), 1042432  }
   0x6   : > { %246 = sbr.rel (%p243_p2) target bundleno = 323 (0x143), region = 44  ;;  %408 = vmatprep.subr.bf16.mxu0 (!%p243_p2), %v1059_v0  ;;  %528 = vmatprep.subr.bf16.mxu1 (!%p243_p2), %v1059_v0  ;;  %v815_v2 = vld [vmem:[%s1257_s5] sm:$0xff] (!%p243_p2)  ;;  %v816_v3 = vld [vmem:[%s1257_s5 + $0x8] sm:$0xff] (!%p243_p2)  ;;  %vm839_vm2 = vcmask (!%p243_p2), 199680  }
   0x7   : > { %1007 = vset.pattern.permute.xlu0 (!%p243_p2), %v1059_v0  ;;  %956 = vmatprep.mubr.msk.bf16.mxu0 (!%p243_p2), %vm400_vm0, %v1108_v1  ;;  %v1193_v26 = vld [vmem:[%s1256_s4] ss:$8 sps:$4 sm:$0xff] (!%p243_p2)  }
   0x8   : > { %967 = vmatprep.mubr.msk.bf16.mxu1 (!%p243_p2), %vm400_vm0, %v1108_v1  ;;  %819 = vperm.xlu0 (!%p243_p2), %1007, %v815_v2  }
   0xc   : > { %824 = vperm.xlu0 (!%p243_p2), %1007, %v816_v3  }
   0xd   : > { %s1260_s22 = smov (!%p287_p3, %s933_s22), 1 }
   0xe   : > { %s1121_s27 = smul.u32 76, %s1260_s22  ;;  %s994_s20 = sshll.u32 %s1260_s22, 3 }
   0xf   : > { %s311_s25 = scalar_lea.vmem %s1258_s6, %s994_s20 }
  0x10   : > { %s1130_s8 = scalar_lea.vmem %s1252_s0, %s1121_s27  ;;  %s1136_s11 = scalar_lea.vmem %s1253_s1, %s1121_s27 }
  0x11   : > { %v1008_v4 = vld [vmem:[%s1130_s8] sm:$0xff]   ;;  %v1010_v6 = vld [vmem:[%s1130_s8 + $0x8] sm:$0xff]   ;;  %v1012_v8 = vld [vmem:[%s1130_s8 + $0x10] sm:$0xff]   ;;  %s1163_s14 = scalar_lea.vmem %s1254_s2, %s1121_s27  ;;  %s1171_s17 = scalar_lea.vmem %s1255_s3, %s1121_s27 }
  0x12   : > { %v1009_v5 = vld [vmem:[%s1136_s11] sm:$0xff]   ;;  %409 = vmatpush1.bf16.msra.mxu0 %v1008_v4  ;;  %v1011_v7 = vld [vmem:[%s1136_s11 + $0x8] sm:$0xff]   ;;  %v1013_v9 = vld [vmem:[%s1136_s11 + $0x10] sm:$0xff]  }
  0x13   : > { %529 = vmatpush1.bf16.msra.mxu1 %v1009_v5  ;;  %410 = vmatprep.subr.bf16.mxu0 %v1059_v0  ;;  %v1014_v10 = vld [vmem:[%s1130_s8 + $0x18] sm:$0xff]   ;;  %v1016_v12 = vld [vmem:[%s1130_s8 + $0x20] sm:$0xff]   ;;  %v1018_v14 = vld [vmem:[%s1130_s8 + $0x28] sm:$0xff]  }
  0x14   : > { %530 = vmatprep.subr.bf16.mxu1 %v1059_v0  ;;  %v1015_v11 = vld [vmem:[%s1136_s11 + $0x18] sm:$0xff]   ;;  %v1017_v13 = vld [vmem:[%s1136_s11 + $0x20] sm:$0xff]   ;;  %v1019_v15 = vld [vmem:[%s1136_s11 + $0x28] sm:$0xff]  }
  0x15   : > { %v1020_v16 = vld [vmem:[%s1130_s8 + $0x30] sm:$0xff]   ;;  %v1022_v18 = vld [vmem:[%s1130_s8 + $0x38] sm:$0xff]   ;;  %v1026_v20 = vld [vmem:[%s1130_s8 + $0x48] ss:$0 sps:$4 sm:$0x77]  }
  0x16   : > { %411 = vmatpush1.bf16.msra.mxu0 %v1010_v6  ;;  %v1021_v17 = vld [vmem:[%s1136_s11 + $0x30] sm:$0xff]   ;;  %v1023_v19 = vld [vmem:[%s1136_s11 + $0x38] sm:$0xff]   ;;  %v1024_v21 = vld [vmem:[%s1130_s8 + $0x40] sm:$0xff]   ;;  %v406_v24 = vsel %vm404_vm1, %v1026_v20, 0 }
  0x17   : > { %531 = vmatpush1.bf16.msra.mxu1 %v1011_v7  ;;  %412 = vmatprep.subr.bf16.mxu0 %v1059_v0  ;;  %v1027_v22 = vld [vmem:[%s1136_s11 + $0x48] ss:$0 sps:$4 sm:$0x77]   ;;  %v1025_v23 = vld [vmem:[%s1136_s11 + $0x40] sm:$0xff]   ;;  %v1035_v31 = vld [vmem:[%s1163_s14 + $0x10] sm:$0xff]  }
  0x18   : > { %532 = vmatprep.subr.bf16.mxu1 %v1059_v0  ;;  %v526_v25 = vsel %vm404_vm1, %v1027_v22, 0  ;;  %v1031_v27 = vld [vmem:[%s1163_s14] sm:$0xff]   ;;  %v1033_v29 = vld [vmem:[%s1163_s14 + $0x8] sm:$0xff]   ;;  %v1036_v32 = vld [vmem:[%s1171_s17 + $0x10] sm:$0xff]  }
  0x19   : > { %v1032_v28 = vld [vmem:[%s1171_s17] sm:$0xff]   ;;  %v1034_v30 = vld [vmem:[%s1171_s17 + $0x8] sm:$0xff]   ;;  %v1037_v33 = vld [vmem:[%s1163_s14 + $0x18] sm:$0xff]  }
  0x1a   : > { %413 = vmatpush1.bf16.msra.mxu0 %v1012_v8  ;;  %v1038_v34 = vld [vmem:[%s1171_s17 + $0x18] sm:$0xff]   ;;  %v1039_v35 = vld [vmem:[%s1163_s14 + $0x20] sm:$0xff]   ;;  %v1041_v37 = vld [vmem:[%s1163_s14 + $0x28] sm:$0xff]  }
  0x1b   : > { %533 = vmatpush1.bf16.msra.mxu1 %v1013_v9  ;;  %414 = vmatprep.subr.bf16.mxu0 %v1059_v0  ;;  %v1040_v36 = vld [vmem:[%s1171_s17 + $0x20] sm:$0xff]   ;;  %v1042_v38 = vld [vmem:[%s1171_s17 + $0x28] sm:$0xff]   ;;  %v1043_v39 = vld [vmem:[%s1163_s14 + $0x30] sm:$0xff]  }
  0x1c   : > { %534 = vmatprep.subr.bf16.mxu1 %v1059_v0  ;;  %v1044_v40 = vld [vmem:[%s1171_s17 + $0x30] sm:$0xff]   ;;  %v1045_v41 = vld [vmem:[%s1163_s14 + $0x38] sm:$0xff]   ;;  %v1047_v43 = vld [vmem:[%s1163_s14 + $0x40] sm:$0xff]  }
  0x1d   : > { %v1046_v42 = vld [vmem:[%s1171_s17 + $0x38] sm:$0xff]   ;;  %v1048_v44 = vld [vmem:[%s1171_s17 + $0x40] sm:$0xff]   ;;  %v1049_v45 = vld [vmem:[%s1163_s14 + $0x48] ss:$0 sps:$4 sm:$0x77]  }
  0x1e   : > { %415 = vmatpush1.bf16.msra.mxu0 %v1014_v10  ;;  %v1050_v46 = vld [vmem:[%s1171_s17 + $0x48] ss:$0 sps:$4 sm:$0x77]   ;;  %v648_v47 = vsel %vm404_vm1, %v1049_v45, 0 }
  0x1f   : > { %535 = vmatpush1.bf16.msra.mxu1 %v1015_v11  ;;  %416 = vmatprep.subr.bf16.mxu0 %v1059_v0  ;;  %v768_v48 = vsel %vm404_vm1, %v1050_v46, 0 }
  0x20   : > { %536 = vmatprep.subr.bf16.mxu1 %v1059_v0 }
  0x22   : > { %417 = vmatpush1.bf16.msra.mxu0 %v1016_v12 }
  0x23   : > { %537 = vmatpush1.bf16.msra.mxu1 %v1017_v13  ;;  %418 = vmatprep.subr.bf16.mxu0 %v1059_v0 }
  0x24   : > { %538 = vmatprep.subr.bf16.mxu1 %v1059_v0 }
  0x26   : > { %419 = vmatpush1.bf16.msra.mxu0 %v1018_v14 }
  0x27   : > { %539 = vmatpush1.bf16.msra.mxu1 %v1019_v15  ;;  %420 = vmatprep.subr.bf16.mxu0 %v1059_v0 }
  0x28   : > { %540 = vmatprep.subr.bf16.mxu1 %v1059_v0 }
  0x2a   : > { %421 = vmatpush1.bf16.msra.mxu0 %v1020_v16 }
  0x2b   : > { %541 = vmatpush1.bf16.msra.mxu1 %v1021_v17  ;;  %422 = vmatprep.subr.bf16.mxu0 %v1059_v0 }
  0x2c   : > { %542 = vmatprep.subr.bf16.mxu1 %v1059_v0 }
  0x2e   : > { %423 = vmatpush1.bf16.msra.mxu0 %v1022_v18 }
  0x2f   : > { %543 = vmatpush1.bf16.msra.mxu1 %v1023_v19  ;;  %424 = vmatprep.subr.bf16.mxu0 %v1059_v0 }
  0x30   : > { %544 = vmatprep.subr.bf16.mxu1 %v1059_v0 }
  0x32   : > { %425 = vmatpush1.bf16.msra.mxu0 %v1024_v21 }
  0x33   : > { %545 = vmatpush1.bf16.msra.mxu1 %v1025_v23  ;;  %426 = vmatprep.subr.bf16.mxu0 %v1059_v0 }
  0x34   : > { %546 = vmatprep.subr.bf16.mxu1 %v1059_v0 }
  0x36   : > { %427 = vmatpush1.bf16.msra.mxu0 %v406_v24 }
  0x37   : > { %547 = vmatpush1.bf16.msra.mxu1 %v526_v25  ;;  %650 = vmatprep.subr.bf16.mxu0 %v1059_v0 }
  0x38   : > { %770 = vmatprep.subr.bf16.mxu1 %v1059_v0 }
  0x39   : > { %441 = vmatmul.mubr.bf16.vlgmr.msra.gmra.mrb[0].mxu0 %v1193_v26 }
  0x3a   : > { %561 = vmatmul.mubr.bf16.vlgmr.msra.gmra.mrb[0].mxu1 %v1193_v26  ;;  %651 = vmatpush1.bf16.msra.mxu0 %v1031_v27 }
  0x3b   : > { %771 = vmatpush1.bf16.msra.mxu1 %v1032_v28  ;;  %652 = vmatprep.subr.bf16.mxu0 %v1059_v0 }
  0x3c   : > { %772 = vmatprep.subr.bf16.mxu1 %v1059_v0  ;;  %978 = vmatprep.mubr.msk.bf16.mxu0 %vm400_vm0, %v1108_v1 }
  0x3d   : > { %989 = vmatprep.mubr.msk.bf16.mxu1 %vm400_vm0, %v1108_v1 }
  0x3e   : > { %653 = vmatpush1.bf16.msra.mxu0 %v1033_v29 }
  0x3f   : > { %773 = vmatpush1.bf16.msra.mxu1 %v1034_v30  ;;  %654 = vmatprep.subr.bf16.mxu0 %v1059_v0 }
  0x40   : > { %774 = vmatprep.subr.bf16.mxu1 %v1059_v0 }
  0x42   : > { %655 = vmatpush1.bf16.msra.mxu0 %v1035_v31 }
  0x43   : > { %775 = vmatpush1.bf16.msra.mxu1 %v1036_v32  ;;  %656 = vmatprep.subr.bf16.mxu0 %v1059_v0 }
  0x44   : > { %776 = vmatprep.subr.bf16.mxu1 %v1059_v0 }
  0x46   : > { %657 = vmatpush1.bf16.msra.mxu0 %v1037_v33 }
  0x47   : > { %777 = vmatpush1.bf16.msra.mxu1 %v1038_v34  ;;  %658 = vmatprep.subr.bf16.mxu0 %v1059_v0 }
  0x48   : > { %778 = vmatprep.subr.bf16.mxu1 %v1059_v0 }
  0x4a   : > { %659 = vmatpush1.bf16.msra.mxu0 %v1039_v35 }
  0x4b   : > { %779 = vmatpush1.bf16.msra.mxu1 %v1040_v36  ;;  %660 = vmatprep.subr.bf16.mxu0 %v1059_v0 }
  0x4c   : > { %780 = vmatprep.subr.bf16.mxu1 %v1059_v0 }
  0x4e   : > { %661 = vmatpush1.bf16.msra.mxu0 %v1041_v37 }
  0x4f   : > { %781 = vmatpush1.bf16.msra.mxu1 %v1042_v38  ;;  %662 = vmatprep.subr.bf16.mxu0 %v1059_v0 }
  0x50   : > { %782 = vmatprep.subr.bf16.mxu1 %v1059_v0 }
  0x52   : > { %663 = vmatpush1.bf16.msra.mxu0 %v1043_v39 }
  0x53   : > { %783 = vmatpush1.bf16.msra.mxu1 %v1044_v40  ;;  %664 = vmatprep.subr.bf16.mxu0 %v1059_v0 }
  0x54   : > { %784 = vmatprep.subr.bf16.mxu1 %v1059_v0 }
  0x56   : > { %665 = vmatpush1.bf16.msra.mxu0 %v1045_v41 }
  0x57   : > { %785 = vmatpush1.bf16.msra.mxu1 %v1046_v42  ;;  %666 = vmatprep.subr.bf16.mxu0 %v1059_v0 }
  0x58   : > { %786 = vmatprep.subr.bf16.mxu1 %v1059_v0 }
  0x5a   : > { %667 = vmatpush1.bf16.msra.mxu0 %v1047_v43 }
  0x5b   : > { %787 = vmatpush1.bf16.msra.mxu1 %v1048_v44  ;;  %668 = vmatprep.subr.bf16.mxu0 %v1059_v0 }
  0x5c   : > { %788 = vmatprep.subr.bf16.mxu1 %v1059_v0 }
  0x5e   : > { %669 = vmatpush1.bf16.msra.mxu0 %v648_v47 }
  0x5f   : > { %789 = vmatpush1.bf16.msra.mxu1 %v768_v48 }
  0x61   : > { %683 = vmatmul.mubr.bf16.vlgmr.msra.gmra.mrb[4].mxu0 %v1193_v26 }
  0x62   : > { %803 = vmatmul.mubr.bf16.vlgmr.msra.gmra.mrb[4].mxu1 %v1193_v26 }
  0x87   : > { %v820_v59 = vpop.permute.xlu0 %819 }
  0x8b   : > { %v825_v9 = vpop.permute.xlu0 %824 }
 0x10c   : > { %v442_v49 = vpop.f32.mrb[0].mxu0 }
 0x10d   : > { %v562_v50 = vpop.f32.mrb[0].mxu1  ;;  %v444_v51 = vpop.f32.mrb[1].mxu0 }
 0x10e   : > { %v569_v52 = vmax.f32 %v442_v49, %v562_v50  ;;  %v564_v53 = vpop.f32.mrb[1].mxu1  ;;  %v445_v54 = vpop.f32.mrb[2].mxu0 }
 0x10f   : > { %v565_v55 = vpop.f32.mrb[2].mxu1  ;;  %v447_v56 = vpop.f32.mrb[3].mxu0 }
 0x110   : > { %v570_v57 = vmax.f32 %v445_v54, %v565_v55  ;;  %v567_v58 = vpop.f32.mrb[3].mxu1 }
 0x134   : > { %v684_v60 = vpop.f32.mrb[4].mxu0 }
 0x135   : > { %v804_v61 = vpop.f32.mrb[4].mxu1  ;;  %v686_v62 = vpop.f32.mrb[5].mxu0 }
 0x136   : > { %v811_v63 = vmax.f32 %v684_v60, %v804_v61  ;;  %v806_v0 = vpop.f32.mrb[5].mxu1  ;;  %v687_v1 = vpop.f32.mrb[6].mxu0 }
 0x137   : > { %v807_v2 = vpop.f32.mrb[6].mxu1  ;;  %v689_v3 = vpop.f32.mrb[7].mxu0 }
 0x138   : > { %v813_v4 = vmax.f32 %v569_v52, %v811_v63  ;;  %v812_v5 = vmax.f32 %v687_v1, %v807_v2  ;;  %v809_v6 = vpop.f32.mrb[7].mxu1 }
 0x13a   : > { %v827_v7 = vadd.f32 %v820_v59, %v813_v4  ;;  %v814_v8 = vmax.f32 %v570_v57, %v812_v5 }
 0x13c   : > { %v829_v10 = vmax.f32 %v827_v7, 0.0  ;;  %v828_v11 = vadd.f32 %v825_v9, %v814_v8 }
 0x13e   : > { %v995_v12 = vpack.c.bf16 %v829_v10, %v829_v10  ;;  %v830_v13 = vmax.f32 %v828_v11, 0.0 }
 0x140   : > { %840 = vst.msk [vmem:[%s311_s25] sm:$0xf] %vm839_vm2, %v995_v12  ;;  %v996_v14 = vpack.c.bf16 %v830_v13, %v830_v13 }
 0x142   : > { %841 = vst.msk [vmem:[%s311_s25 + $0x4] sm:$0xf] %vm839_vm2, %v996_v14 }
 0x143 PF: > { %s16_s21 = sadd.s32 1, %s1057_s21  }
 0x144   : > { %p13_p4 = scmp.ge.s32.totalorder %s16_s21, 4  }
 0x146   :  { %15 = sbr.rel (!%p13_p4) target bundleno = 1 (0x1), region = 83 }

// kernel: net_forward.5
= control target key start
LH: loop header
LB: loop body
LE: loop exit
PB: predicated region body
PF: predicated region fallthrough
CT: control target
= control target key end

     0   :  { %v770_v1 = vmov 0   ;;  %v98_v20 = vlaneseq  ;;  %v771_v25 = vmov 1966171168   ;;  %vm264_vm0 = vcmask 130048   ;;  %s981_s0 = inlined_call_operand.vmem [shape: bf16[2,400], index: 0, kind: input, shape index: {}]   ;;  %s982_s1 = inlined_call_operand.vmem [shape: bf16[400,120], index: 1, kind: input, shape index: {}]   ;;  %s983_s2 = inlined_call_operand.vmem [shape: f32[1,120], index: 2, kind: input, shape index: {}]   ;;  %s984_s3 = inlined_call_operand.vmem [shape: bf16[120,84], index: 3, kind: input, shape index: {}]   ;;  %s985_s4 = inlined_call_operand.vmem [shape: f32[1,84], index: 4, kind: input, shape index: {}]   ;;  %s986_s5 = inlined_call_operand.vmem [shape: bf16[84,10], index: 5, kind: input, shape index: {}]   ;;  %s987_s6 = inlined_call_operand.vmem [shape: f32[1,10], index: 6, kind: input, shape index: {}]   ;;  %s988_s7 = inlined_call_operand.hbm [shape: f32[2,10], index: 7, kind: output, shape index: {}]  }
   0x1   :  { %v707_v0 = vld [vmem:[%s982_s1 + $0x40] sm:$0xff]   ;;  %308 = vmatprep.subr.bf16.mxu1 %v770_v1  ;;  %v710_v4 = vld [vmem:[%s982_s1 + $0x48] sm:$0xff]   ;;  %v713_v7 = vld [vmem:[%s982_s1 + $0x50] sm:$0xff]   ;;  %v96_v26 = vunpack.c.l.s4 %v771_v25  ;;  %v772_v38 = vmov 0.0  }
   0x2   :  { %v708_v2 = vld [vmem:[%s982_s1 + $0x80] sm:$0xff]   ;;  %628 = vmatprep.subr.bf16.mxu0 %v707_v0  ;;  %v711_v5 = vld [vmem:[%s982_s1 + $0x88] sm:$0xff]   ;;  %v714_v8 = vld [vmem:[%s982_s1 + $0x90] sm:$0xff]   ;;  %v99_v27 = vshrl.u32 %v98_v20, 7 }
   0x3   :  { %v709_v3 = vld [vmem:[%s982_s1] sm:$0xff]   ;;  %309 = vmatpush1.bf16.msra.mxu1 %v708_v2  ;;  %v712_v6 = vld [vmem:[%s982_s1 + $0x8] sm:$0xff]   ;;  %v715_v9 = vld [vmem:[%s982_s1 + $0x10] sm:$0xff]   ;;  %v97_v30 = vunpack.c.0.s8 %v96_v26 }
   0x4   :  { %629 = vmatpush3.bf16.msra.mxu0 %v709_v3  ;;  %310 = vmatprep.subr.bf16.mxu1 %v770_v1  ;;  %v716_v10 = vld [vmem:[%s982_s1 + $0x58] sm:$0xff]   ;;  %v719_v13 = vld [vmem:[%s982_s1 + $0x60] sm:$0xff]   ;;  %v722_v16 = vld [vmem:[%s982_s1 + $0x68] sm:$0xff]  }
   0x5   :  { %630 = vmatprep.subr.bf16.mxu0 %v710_v4  ;;  %v717_v11 = vld [vmem:[%s982_s1 + $0x98] sm:$0xff]   ;;  %v720_v14 = vld [vmem:[%s982_s1 + $0xa0] sm:$0xff]   ;;  %v723_v17 = vld [vmem:[%s982_s1 + $0xa8] sm:$0xff]   ;;  %v100_v32 = vsub.s32 %v97_v30, %v99_v27 }
   0x6   :  { %v718_v12 = vld [vmem:[%s982_s1 + $0x18] sm:$0xff]   ;;  %v721_v15 = vld [vmem:[%s982_s1 + $0x20] sm:$0xff]   ;;  %v724_v18 = vld [vmem:[%s982_s1 + $0x28] sm:$0xff]  }
   0x7   :  { %311 = vmatpush1.bf16.msra.mxu1 %v711_v5  ;;  %v725_v19 = vld [vmem:[%s982_s1 + $0x70] sm:$0xff]   ;;  %v583_v23 = vld.sshfl [vmem:[%s981_s0] sm:$0x33 pattern:$0x75316420]  ;;  %v728_v24 = vld [vmem:[%s982_s1 + $0x78] sm:$0xff]  }
   0x8   :  { %631 = vmatpush3.bf16.msra.mxu0 %v712_v6  ;;  %312 = vmatprep.subr.bf16.mxu1 %v770_v1  ;;  %v726_v21 = vld [vmem:[%s982_s1 + $0xb0] sm:$0xff]   ;;  %v729_v28 = vld [vmem:[%s982_s1 + $0xb8] sm:$0xff]   ;;  %v94_v29 = vcombine.high %v583_v23, %v583_v23  ;;  %v731_v33 = vld [vmem:[%s982_s1 + $0xc0] sm:$0xff]   ;;  %v101_v36 = vrot.slane %v583_v23, %v100_v32 }
   0x9   :  { %632 = vmatprep.subr.bf16.mxu0 %v713_v7  ;;  %v727_v22 = vld [vmem:[%s982_s1 + $0x30] sm:$0xff]   ;;  %v730_v31 = vld [vmem:[%s982_s1 + $0x38] sm:$0xff]   ;;  %v732_v34 = vld [vmem:[%s984_s3] sm:$0xff]  }
   0xa   :  { %v108_v35 = vrot.slane %v94_v29, %v100_v32  ;;  %v109_v39 = vcombine.high %v101_v36, %v101_v36  ;;  %v733_v40 = vld [vmem:[%s984_s3 + $0x8] sm:$0xff]  }
   0xb   :  { %313 = vmatpush1.bf16.msra.mxu1 %v714_v8 }
   0xc   :  { %633 = vmatpush3.bf16.msra.mxu0 %v715_v9  ;;  %314 = vmatprep.subr.bf16.mxu1 %v770_v1  ;;  %v110_v37 = vcombine.high %v108_v35, %v108_v35 }
   0xd   :  { %634 = vmatprep.subr.bf16.mxu0 %v716_v10  ;;  %300 = vmatprep.mubr.bf16.mxu0 %v108_v35 }
   0xe   :  { %609 = vmatprep.mubr.msk.bf16.mxu1 %vm264_vm0, %v110_v37 }
   0xf   :  { %315 = vmatpush1.bf16.msra.mxu1 %v717_v11 }
  0x10   :  { %635 = vmatpush3.bf16.msra.mxu0 %v718_v12  ;;  %316 = vmatprep.subr.bf16.mxu1 %v770_v1 }
  0x11   :  { %636 = vmatprep.subr.bf16.mxu0 %v719_v13 }
  0x13   :  { %317 = vmatpush1.bf16.msra.mxu1 %v720_v14 }
  0x14   :  { %637 = vmatpush3.bf16.msra.mxu0 %v721_v15  ;;  %318 = vmatprep.subr.bf16.mxu1 %v770_v1 }
  0x15   :  { %638 = vmatprep.subr.bf16.mxu0 %v722_v16 }
  0x17   :  { %319 = vmatpush1.bf16.msra.mxu1 %v723_v17 }
  0x18   :  { %639 = vmatpush3.bf16.msra.mxu0 %v724_v18  ;;  %320 = vmatprep.subr.bf16.mxu1 %v770_v1 }
  0x19   :  { %640 = vmatprep.subr.bf16.mxu0 %v725_v19 }
  0x1b   :  { %321 = vmatpush1.bf16.msra.mxu1 %v726_v21 }
  0x1c   :  { %641 = vmatpush3.bf16.msra.mxu0 %v727_v22  ;;  %322 = vmatprep.subr.bf16.mxu1 %v770_v1 }
  0x1d   :  { %642 = vmatprep.subr.bf16.mxu0 %v728_v24 }
  0x1f   :  { %323 = vmatpush1.bf16.msra.mxu1 %v729_v28 }
  0x20   :  { %643 = vmatpush3.bf16.msra.mxu0 %v730_v31  ;;  %324 = vmatprep.subr.bf16.mxu1 %v770_v1 }
  0x21   :  { %666 = vmatprep.subr.bf16.mxu0 %v772_v38 }
  0x23   :  { %301 = vmatmul.mubr.bf16.vlgmr.msra.gmra.mrb[0].mxu0 %v101_v36  ;;  %325 = vmatpush1.bf16.msra.mxu1 %v731_v33 }
  0x24   :  { %667 = vmatpush3.bf16.msra.mxu0 %v732_v34 }
  0x25   :  { %12 = vsyncpa [#allocation3], 0  ;;  %668 = vmatprep.subr.bf16.mxu0 %v772_v38  ;;  %686 = vmatprep.subr.bf16.mxu1 %v772_v38  ;;  %v734_v41 = vld [vmem:[%s984_s3 + $0x10] sm:$0xff]   ;;  %v735_v42 = vld [vmem:[%s984_s3 + $0x18] sm:$0xff]   ;;  %vm421_vm1 = vcmask 1043456   ;;  %vm773_vm2 = vmmov 0  }
  0x26   :  { %341 = vmatmul.mubr.bf16.vlgmr.msra.gmra.mrb[0].mxu1 %v109_v39  ;;  %v736_v43 = vld [vmem:[%s984_s3 + $0x20] sm:$0xff]   ;;  %v737_v44 = vld [vmem:[%s984_s3 + $0x28] sm:$0xff]   ;;  %v738_v45 = vld [vmem:[%s984_s3 + $0x30] sm:$0xff]   ;;  %682 = vmatprep.mubr.msk.bf16.mxu0 %vm773_vm2, %v772_v38  ;;  %vm417_vm3 = vcmask 982016   ;;  %vm522_vm4 = vcmask 1041408   ;;  %vm518_vm5 = vcmask 687104  }
  0x27   :  { %v739_v46 = vld [vmem:[%s984_s3 + $0x38] ss:$0 sps:$4 sm:$0xff]   ;;  %698 = vmatprep.mubr.msk.bf16.mxu1 %vm773_vm2, %v772_v38  ;;  %v740_v48 = vld [vmem:[%s986_s5] sm:$0xff]   ;;  %v741_v49 = vld [vmem:[%s986_s5 + $0x8] sm:$0xff]   ;;  %vm566_vm6 = vcmask 74752  }
  0x28   :  { %669 = vmatpush3.bf16.msra.mxu0 %v733_v40  ;;  %v423_v47 = vsel %vm421_vm1, %v739_v46, 0  ;;  %687 = vmatpush3.bf16.msra.mxu1 %v740_v48  ;;  %v742_v50 = vld [vmem:[%s986_s5 + $0x10] sm:$0xff]   ;;  %v743_v51 = vld [vmem:[%s986_s5 + $0x18] sm:$0xff]   ;;  %v582_v54 = vld [vmem:[%s983_s2] ss:$0 sm:$0xff] }
  0x29   :  { %670 = vmatprep.subr.bf16.mxu0 %v772_v38  ;;  %688 = vmatprep.subr.bf16.mxu1 %v772_v38  ;;  %v744_v2 = vld [vmem:[%s986_s5 + $0x20] sm:$0xff]   ;;  %v745_v3 = vld [vmem:[%s986_s5 + $0x28] ss:$0 sps:$4 sm:$0x33]   ;;  %s774_s5 = smov [#allocation2]  }
  0x2a   :  { %v524_v4 = vsel %vm522_vm4, %v745_v3, 0  ;;  %v610_v5 = vld [vmem:[%s985_s4] ss:$0 sm:$0xff]  ;;  %s574_s12 = sshll.u32 %s774_s5, 4  ;;  %s575_s12 = int_to_ptr.vmem [resolvable:$true] %s574_s12 }
  0x2b   :  { %v620_v13 = vld [vmem:[%s987_s6] ss:$0 sm:$0xff]  ;;  %s746_s4 = scalar_lea.vmem %s575_s12, 32  ;;  %p751_p1 = scmp.lt.s32.totalorder %s575_s12, %s575_s12 }
  0x2c   :  { %671 = vmatpush3.bf16.msra.mxu0 %v734_v41  ;;  %689 = vmatpush3.bf16.msra.mxu1 %v741_v49  ;;  %p747_p0 = scmp.ne.s32.totalorder %s575_s12, %s746_s4  ;;  %p752_p2 = scmp.lt.s32.totalorder %s746_s4, %s746_s4 }
  0x2d   :  { %672 = vmatprep.subr.bf16.mxu0 %v772_v38  ;;  %690 = vmatprep.subr.bf16.mxu1 %v772_v38 }
  0x2e   :  { %p753_p3 = por %p752_p2, %p751_p1 }
  0x30   :  { %673 = vmatpush3.bf16.msra.mxu0 %v735_v42  ;;  %691 = vmatpush3.bf16.msra.mxu1 %v742_v50  ;;  %p754_p4 = pnand %p753_p3, %p747_p0 }
  0x31   :  { %674 = vmatprep.subr.bf16.mxu0 %v772_v38  ;;  %692 = vmatprep.subr.bf16.mxu1 %v772_v38 }
  0x34   :  { %675 = vmatpush3.bf16.msra.mxu0 %v736_v43  ;;  %693 = vmatpush3.bf16.msra.mxu1 %v743_v51 }
  0x35   :  { %676 = vmatprep.subr.bf16.mxu0 %v772_v38  ;;  %694 = vmatprep.subr.bf16.mxu1 %v772_v38 }
  0x38   :  { %677 = vmatpush3.bf16.msra.mxu0 %v737_v44  ;;  %695 = vmatpush3.bf16.msra.mxu1 %v744_v2 }
  0x39   :  { %678 = vmatprep.subr.bf16.mxu0 %v772_v38  ;;  %696 = vmatprep.subr.bf16.mxu1 %v772_v38 }
  0x3c   :  { %679 = vmatpush3.bf16.msra.mxu0 %v738_v45  ;;  %697 = vmatpush3.bf16.msra.mxu1 %v524_v4 }
  0x3d   :  { %680 = vmatprep.subr.bf16.mxu0 %v772_v38 }
  0x40   :  { %681 = vmatpush3.bf16.msra.mxu0 %v423_v47 }
  0xf6   :  { %v644_v52 = vpop.f32.mrb[0].mxu0 }
  0xf7   :  { %v645_v53 = vpop.f32.mrb[1].mxu0 }
  0xf8   :  { %v646_v55 = vadd.f32 %v645_v53, %v644_v52  ;;  %v647_v56 = vpop.f32.mrb[2].mxu0 }
  0xf9   :  { %v648_v57 = vpop.f32.mrb[3].mxu0  ;;  %v342_v58 = vpop.f32.mrb[0].mxu1 }
  0xfa   :  { %v303_v59 = vadd.f32 %v646_v55, %v582_v54  ;;  %v344_v60 = vpop.f32.mrb[1].mxu1 }
  0xfb   :  { %v345_v61 = vpop.f32.mrb[2].mxu1 }
  0xfc   :  { %v343_v62 = vadd.f32 %v342_v58, %v303_v59  ;;  %v346_v63 = vpop.f32.mrb[3].mxu1 }
  0xfe   :  { %v348_v0 = vmax.f32 %v343_v62, 0.0 }
 0x100   :  { %v349_v1 = vpack.c.bf16 %v348_v0, %v348_v0 }
 0x102   :  { %683 = vmatmul.mubr.msk.bf16.vlgmr.msra.gmra.mrb[4].mxu0 %vm417_vm3, %v349_v1 }
 0x1d5   :  { %v459_v6 = vpop.f32.mrb[4].mxu0 }
 0x1d6   :  { %v460_v7 = vadd.f32 %v610_v5, %v459_v6  ;;  %v684_v8 = vpop.f32.mrb[5].mxu0 }
 0x1d7   :  { %v462_v9 = vpop.f32.mrb[6].mxu0 }
 0x1d8   :  { %v465_v10 = vmax.f32 %v460_v7, 0.0  ;;  %v685_v11 = vpop.f32.mrb[7].mxu0 }
 0x1da   :  { %v466_v12 = vpack.c.bf16 %v465_v10, %v465_v10 }
 0x1dc   :  { %699 = vmatmul.mubr.msk.bf16.vlgmr.msra.gmra.mrb[4].mxu1 %vm518_vm5, %v466_v12 }
 0x2af   :  { %v560_v14 = vpop.f32.mrb[4].mxu1 }
 0x2b0   :  { %v561_v15 = vadd.f32 %v620_v13, %v560_v14  ;;  %v700_v16 = vpop.f32.mrb[5].mxu1 }
 0x2b1   :  { %v563_v17 = vpop.f32.mrb[6].mxu1 }
 0x2b2   :  { %v701_v18 = vpop.f32.mrb[7].mxu1  ;;  %567 = vst.msk [vmem:[#allocation2] sm:$0x3] %vm566_vm6, %v561_v15 }
 0x2b3   :  { %757 = shalt.err (!%p754_p4)
}
 0x2b4   :  { %s758_s6 = scalar_lea.hbm %s988_s7, 32 }
 0x2b5   :  { %p759_p5 = scmp.ne.s32.totalorder %s988_s7, %s758_s6  ;;  %p762_p6 = scmp.lt.u32.totalorder %s758_s6, %s988_s7 }
 0x2b7   :  { %p764_p7 = pnand %p762_p6, %p759_p5 }
 0x2b9   :  { %767 = shalt.err (!%p764_p7)
}
 0x2ba   :  { %577 = dma.vmem_to_hbm [thread:$0]  %s575_s12, 32, %s988_s7, [#allocation3]  }
 0x2bb   :  { %768 = dma.done.wait [#allocation3], 32  }
 0x2bc   :  { %769 = vsyncadd [#allocation3], 4294967264 }
 0x2bd   :  { %581 = vsyncpa [#allocation3], 1 }

</bundles_post_ra>
